<compile_context>
chip_gen: v6e
topology: v6e:2x2x1
jax: 0.10.0
libtpu: 0.0.40
codegen_flags: <defaults>
</compile_context>

<pallas_src>
import jax
import jax.numpy as jnp
from jax.experimental import pallas as pl
from jax.experimental.pallas import tpu as pltpu


# ----------------------------------------------------------------------------
# Kernel
# ----------------------------------------------------------------------------
def _make_pdenet_kernel(activ, ksize, seq_len):
    """Fused kernel operating on a (C, T) tile, T = nb * seq_len (+ lane pad)."""
    pad = ksize // 2

    def shifted_tap(x, d, lane):
        """y[:, n*L + l] = x[:, n*L + reflect(l + d)]  (torch 'reflect' pad).

        Interior columns come from a lane rotation (XLU); the <= pad boundary
        columns per batch element are fixed with iota-mask selects. Rotation
        wrap-around only ever lands on columns that get fixed anyway.
        """
        if d == 0:
            return x
        t = x.shape[-1]
        y = pltpu.roll(x, (-d) % t, axis=1)
        if d < 0:  # left edge: l + d < 0  ->  reflected index -l - d
            fixes = [(l, -l - d) for l in range(-d)]
        else:      # right edge: l + d >= L -> reflected index 2(L-1) - (l+d)
            fixes = [(l, 2 * (seq_len - 1) - (l + d))
                     for l in range(seq_len - d, seq_len)]
        for l, src in fixes:
            corr = pltpu.roll(x, (l - src) % t, axis=1)
            y = jnp.where(lane == l, corr, y)
        return y

    def conv_mxu(z, w_ref, b_ref, lane):
        """Reflect-padded Conv1d on the MXU. z: (C_in, T) -> (C_out, T)."""
        c_out = w_ref.shape[1]
        acc = jnp.zeros((c_out, z.shape[-1]), jnp.float32)
        for k in range(ksize):
            tap = shifted_tap(z, k - pad, lane)
            acc = acc + jnp.dot(w_ref[k], tap,
                                preferred_element_type=jnp.float32)
        return acc + b_ref[...]

    def conv_vpu_1row(z, w_ref, b_ref, lane):
        """Reflect-padded Conv1d with C_out=1 on the VPU. z: (C_h, T) -> (1, T)."""
        s = jnp.zeros_like(z)
        for k in range(ksize):
            s = s + w_ref[k] * shifted_tap(z, k - pad, lane)
        return jnp.sum(s, axis=0, keepdims=True) + b_ref[...]

    def kernel(x_ref, w1_ref, b1_ref, w2_ref, b2_ref, w3_ref, b3_ref, o_ref):
        x = x_ref[...]
        t = x.shape[-1]
        # In-element position of every lane; computed once and reused.
        lane = jax.lax.broadcasted_iota(jnp.int32, (1, t), 1) % seq_len
        z1 = activ(conv_mxu(x, w1_ref, b1_ref, lane))
        z2 = activ(conv_mxu(z1, w2_ref, b2_ref, lane))
        mu = conv_vpu_1row(z2, w3_ref, b3_ref, lane)
        o_ref[...] = mu.astype(o_ref.dtype)

    return kernel


# ----------------------------------------------------------------------------
# Wrapper
# ----------------------------------------------------------------------------
def _round_up(x, m):
    return (x + m - 1) // m * m


def _choose_batch_tile(n, length):
    """Pick nb (divides n): each grid tile holds nb whole batch elements."""
    total = n * length
    if total <= 2048:
        return n                       # one tile; lanes padded to 128-multiple
    for nb in range(n, 0, -1):         # largest tile first (fewest grid steps)
        tl = nb * length
        if n % nb == 0 and tl % 128 == 0 and tl <= 4096:
            return nb
    return n                           # fallback: whole (padded) slab, 1 tile


def pdenet_forward(a, params, activ_fn):
    """Conv stack of PDENet:
        z1 = activ(conv1(a)); z2 = activ(conv2(z1)); mu = conv3(z2)[:, 0, :]
    a: (N, C_in, L); every conv uses reflect padding K//2, stride 1.
    Returns mu of shape (N, L) in float32."""
    (w1, b1), (w2, b2), (w3, b3) = params
    n, c_in, length = a.shape
    n_f, _, ksize = w1.shape
    pad = ksize // 2
    assert ksize % 2 == 1, "only odd kernel_size keeps the torch output length"
    assert pad < length, "reflect padding requires pad < L"

    # ---- lane-dense channels-first layout: (C, N*L) --------------------------
    total = n * length
    x2d = jnp.transpose(a.astype(jnp.float32), (1, 0, 2)).reshape(c_in, total)

    nb = _choose_batch_tile(n, length)
    if nb == n:
        t_pad = _round_up(total, 128)          # lane-dense single tile
        num_tiles, tl = 1, t_pad
        if t_pad > total:
            x2d = jnp.pad(x2d, ((0, 0), (0, t_pad - total)))
    else:
        t_pad = total                          # tiles already 128-multiples
        num_tiles, tl = n // nb, nb * length

    # ---- weights: (C_out, C_in, K) -> (K, C_out, C_in); biases as columns ----
    w1k = jnp.transpose(w1.astype(jnp.float32), (2, 0, 1))
    w2k = jnp.transpose(w2.astype(jnp.float32), (2, 0, 1))
    w3k = jnp.transpose(w3.astype(jnp.float32), (2, 1, 0))      # (K, C_h, 1)
    b1c = b1.reshape(n_f, 1).astype(jnp.float32)
    b2c = b2.reshape(n_f, 1).astype(jnp.float32)
    b3c = b3.reshape(1, 1).astype(jnp.float32)

    flops = 2 * total * ksize * (n_f * c_in + n_f * n_f + n_f)
    bytes_accessed = 4 * (c_in * t_pad + w1k.size + w2k.size + w3k.size
                          + b1c.size + b2c.size + b3c.size + t_pad)

    const3 = lambda i: (0, 0, 0)
    const2 = lambda i: (0, 0)
    grid_spec = pltpu.PrefetchScalarGridSpec(
        num_scalar_prefetch=0,
        grid=(num_tiles,),
        in_specs=[
            pl.BlockSpec((c_in, tl), lambda i: (0, i)),    # activations: tiled
            pl.BlockSpec(w1k.shape, const3),               # weights/bias:
            pl.BlockSpec(b1c.shape, const2),               #   resident in VMEM
            pl.BlockSpec(w2k.shape, const3),
            pl.BlockSpec(b2c.shape, const2),
            pl.BlockSpec(w3k.shape, const3),
            pl.BlockSpec(b3c.shape, const2),
        ],
        out_specs=pl.BlockSpec((1, tl), lambda i: (0, i)),
    )

    mu2d = pl.pallas_call(
        _make_pdenet_kernel(activ_fn, ksize, length),
        out_shape=jax.ShapeDtypeStruct((1, t_pad), jnp.float32),
        grid_spec=grid_spec,
        compiler_params=pltpu.CompilerParams(
            dimension_semantics=("parallel",),
            vmem_limit_bytes=32 * 1024 * 1024),
        cost_estimate=pl.CostEstimate(flops=flops, transcendentals=0,
                                      bytes_accessed=bytes_accessed),
    )(x2d, w1k, b1c, w2k, b2c, w3k, b3c)

    return mu2d[0, :total].reshape(n, length)


# ----------------------------------------------------------------------------
# Pure-JAX reference (correctness check) and param init
# ----------------------------------------------------------------------------
def _conv1d_reflect_ref(x, w, b, activ):
    pad = w.shape[2] // 2
    length = x.shape[2]
    xp = jnp.pad(x, ((0, 0), (0, 0), (pad, pad)), mode="reflect")
    out = jnp.zeros((x.shape[0], w.shape[0], length), jnp.float32)
    for k in range(w.shape[2]):
        out = out + jnp.einsum("oi,nil->nol", w[:, :, k], xp[:, :, k:k + length])
    out = out + b[None, :, None]
    return activ(out) if activ is not None else out


def _pdenet_forward_ref(a, params, activ_fn):
    (w1, b1), (w2, b2), (w3, b3) = params
    z1 = _conv1d_reflect_ref(a, w1, b1, activ_fn)
    z2 = _conv1d_reflect_ref(z1, w2, b2, activ_fn)
    return _conv1d_reflect_ref(z2, w3, b3, None)[:, 0, :]


def init_params(key, n_inputs, n_filters, kernel_size):
    """Deterministic synthetic init (uniform, torch-conv-like scale)."""
    def conv_init(k, c_out, c_in, ksz):
        kw, kb = jax.random.split(k)
        bound = 1.0 / jnp.sqrt(c_in * ksz)
        w = jax.random.uniform(kw, (c_out, c_in, ksz), jnp.float32, -bound, bound)
        b = jax.random.uniform(kb, (c_out,), jnp.float32, -bound, bound)
        return w, b

    k1, k2, k3 = jax.random.split(key, 3)
    p1 = conv_init(k1, n_filters, n_inputs, kernel_size)
    p2 = conv_init(k2, n_filters, n_filters, kernel_size)
    p3 = conv_init(k3, 1, n_filters, kernel_size)
    return (p1, p2, p3)


if __name__ == "__main__":
    key = jax.random.PRNGKey(0)
    k_in, k_par = jax.random.split(key)

    # Small shapes consistent with the module: batch=2, n_inputs=4, length=16,
    # n_filters=8, kernel_size=3, activ_fn='relu'.
    N, C_IN, L = 2, 4, 16
    N_FILTERS, KSIZE = 8, 3
    activ = jax.nn.relu

    a = jax.random.normal(k_in, (N, C_IN, L), dtype=jnp.float32)
    params = init_params(k_par, C_IN, N_FILTERS, KSIZE)

    mu = pdenet_forward(a, params, activ)
    jax.block_until_ready(mu)
    assert mu.shape == (N, L)

    mu_ref = _pdenet_forward_ref(a, params, activ)
    err = float(jnp.max(jnp.abs(mu - mu_ref)))
    assert err < 1e-4, f"mismatch vs reference: max abs err = {err}"

    print("KERNEL_OK")
</pallas_src>

<mosaic_0001>
module attributes {stable_mosaic.version = 11 : i64} {
  func.func @kernel(%arg0: i32, %arg1: memref<4x128xf32, #tpu.memory_space<vmem>>, %arg2: memref<3x8x4xf32, #tpu.memory_space<vmem>>, %arg3: memref<8x1xf32, #tpu.memory_space<vmem>>, %arg4: memref<3x8x8xf32, #tpu.memory_space<vmem>>, %arg5: memref<8x1xf32, #tpu.memory_space<vmem>>, %arg6: memref<3x8x1xf32, #tpu.memory_space<vmem>>, %arg7: memref<1x1xf32, #tpu.memory_space<vmem>>, %arg8: memref<1x128xf32, #tpu.memory_space<vmem>>) attributes {dimension_semantics = [#tpu.dimension_semantics<parallel>], iteration_bounds = array<i64: 1>, scalar_prefetch = 0 : i64, scratch_operands = 0 : i64, tpu.core_type = #tpu.core_type<tc>, window_params = [{transform_indices = @transform_0, window_bounds = array<i64: 4, 128>}, {pipeline_mode = #tpu.pipeline_mode<synchronous>, transform_indices = @transform_1, window_bounds = array<i64: 3, 8, 4>}, {pipeline_mode = #tpu.pipeline_mode<synchronous>, transform_indices = @transform_2, window_bounds = array<i64: 8, 1>}, {pipeline_mode = #tpu.pipeline_mode<synchronous>, transform_indices = @transform_3, window_bounds = array<i64: 3, 8, 8>}, {pipeline_mode = #tpu.pipeline_mode<synchronous>, transform_indices = @transform_4, window_bounds = array<i64: 8, 1>}, {pipeline_mode = #tpu.pipeline_mode<synchronous>, transform_indices = @transform_5, window_bounds = array<i64: 3, 8, 1>}, {pipeline_mode = #tpu.pipeline_mode<synchronous>, transform_indices = @transform_6, window_bounds = array<i64: 1, 1>}, {transform_indices = @transform_7, window_bounds = array<i64: 1, 128>}]} {
    %c0 = arith.constant 0 : index
    %c0_0 = arith.constant 0 : index
    %0 = vector.load %arg1[%c0, %c0_0] : memref<4x128xf32, #tpu.memory_space<vmem>>, vector<4x128xf32>
    %1 = tpu.iota {dimensions = array<i32: 1>} : vector<1x128xi32>
    %c16_i32 = arith.constant 16 : i32
    %c0_i32 = arith.constant 0 : i32
    %2 = arith.cmpi eq, %c16_i32, %c0_i32 : i32
    %c1_i32 = arith.constant 1 : i32
    %3 = arith.select %2, %c1_i32, %c16_i32 : i32
    %4 = vector.broadcast %3 : i32 to vector<1x128xi32>
    %5 = arith.remsi %1, %4 : vector<1x128xi32>
    %c0_i32_1 = arith.constant 0 : i32
    %6 = vector.broadcast %c0_i32_1 : i32 to vector<1x128xi32>
    %7 = arith.cmpi ne, %5, %6 : vector<1x128xi32>
    %c0_i32_2 = arith.constant 0 : i32
    %8 = vector.broadcast %c0_i32_2 : i32 to vector<1x128xi32>
    %9 = arith.cmpi slt, %5, %8 : vector<1x128xi32>
    %c0_i32_3 = arith.constant 0 : i32
    %10 = arith.cmpi slt, %3, %c0_i32_3 : i32
    %11 = vector.broadcast %10 : i1 to vector<1x128xi1>
    %12 = vector.broadcast %11 : vector<1x128xi1> to vector<1x128xi1>
    %13 = arith.xori %9, %12 : vector<1x128xi1>
    %14 = arith.andi %13, %7 : vector<1x128xi1>
    %15 = vector.broadcast %3 : i32 to vector<1x128xi32>
    %16 = arith.addi %5, %15 : vector<1x128xi32>
    %17 = arith.select %14, %16, %5 : vector<1x128xi1>, vector<1x128xi32>
    %cst = arith.constant 0.000000e+00 : f32
    %18 = vector.broadcast %cst : f32 to vector<8x128xf32>
    %c1_i32_4 = arith.constant 1 : i32
    %19 = tpu.dynamic_rotate %0 by %c1_i32_4 dim 1 : vector<4x128xf32>, i32 -> vector<4x128xf32>
    %c127_i32 = arith.constant 127 : i32
    %20 = tpu.dynamic_rotate %0 by %c127_i32 dim 1 : vector<4x128xf32>, i32 -> vector<4x128xf32>
    %c0_i32_5 = arith.constant 0 : i32
    %21 = vector.broadcast %c0_i32_5 : i32 to vector<1x128xi32>
    %22 = arith.cmpi eq, %17, %21 : vector<1x128xi32>
    %23 = vector.shape_cast %22 : vector<1x128xi1> to vector<1x128xi1>
    %24 = vector.broadcast %23 : vector<1x128xi1> to vector<4x128xi1>
    %25 = arith.select %24, %20, %19 : vector<4x128xi1>, vector<4x128xf32>
    %c0_6 = arith.constant 0 : index
    %c0_7 = arith.constant 0 : index
    %c0_8 = arith.constant 0 : index
    %26 = vector.load %arg2[%c0_6, %c0_7, %c0_8] : memref<3x8x4xf32, #tpu.memory_space<vmem>>, vector<1x8x4xf32>
    %27 = vector.shape_cast %26 : vector<1x8x4xf32> to vector<8x4xf32>
    %cst_9 = arith.constant dense<0.000000e+00> : vector<8x128xf32>
    %28 = tpu.matmul %27, %25, %cst_9 {dimension_numbers = #tpu.dot_dimension_numbers<[1], [0], [0], [1], [0, 0, 1, 1], [], []>} : vector<8x4xf32>, vector<4x128xf32>, vector<8x128xf32> -> vector<8x128xf32>
    %29 = arith.addf %18, %28 : vector<8x128xf32>
    %c1 = arith.constant 1 : index
    %c0_10 = arith.constant 0 : index
    %c0_11 = arith.constant 0 : index
    %30 = vector.load %arg2[%c1, %c0_10, %c0_11] : memref<3x8x4xf32, #tpu.memory_space<vmem>>, vector<1x8x4xf32>
    %31 = vector.shape_cast %30 : vector<1x8x4xf32> to vector<8x4xf32>
    %cst_12 = arith.constant dense<0.000000e+00> : vector<8x128xf32>
    %32 = tpu.matmul %31, %0, %cst_12 {dimension_numbers = #tpu.dot_dimension_numbers<[1], [0], [0], [1], [0, 0, 1, 1], [], []>} : vector<8x4xf32>, vector<4x128xf32>, vector<8x128xf32> -> vector<8x128xf32>
    %33 = arith.addf %29, %32 : vector<8x128xf32>
    %c127_i32_13 = arith.constant 127 : i32
    %34 = tpu.dynamic_rotate %0 by %c127_i32_13 dim 1 : vector<4x128xf32>, i32 -> vector<4x128xf32>
    %c1_i32_14 = arith.constant 1 : i32
    %35 = tpu.dynamic_rotate %0 by %c1_i32_14 dim 1 : vector<4x128xf32>, i32 -> vector<4x128xf32>
    %c15_i32 = arith.constant 15 : i32
    %36 = vector.broadcast %c15_i32 : i32 to vector<1x128xi32>
    %37 = arith.cmpi eq, %17, %36 : vector<1x128xi32>
    %38 = vector.shape_cast %37 : vector<1x128xi1> to vector<1x128xi1>
    %39 = vector.broadcast %38 : vector<1x128xi1> to vector<4x128xi1>
    %40 = arith.select %39, %35, %34 : vector<4x128xi1>, vector<4x128xf32>
    %c2 = arith.constant 2 : index
    %c0_15 = arith.constant 0 : index
    %c0_16 = arith.constant 0 : index
    %41 = vector.load %arg2[%c2, %c0_15, %c0_16] : memref<3x8x4xf32, #tpu.memory_space<vmem>>, vector<1x8x4xf32>
    %42 = vector.shape_cast %41 : vector<1x8x4xf32> to vector<8x4xf32>
    %cst_17 = arith.constant dense<0.000000e+00> : vector<8x128xf32>
    %43 = tpu.matmul %42, %40, %cst_17 {dimension_numbers = #tpu.dot_dimension_numbers<[1], [0], [0], [1], [0, 0, 1, 1], [], []>} : vector<8x4xf32>, vector<4x128xf32>, vector<8x128xf32> -> vector<8x128xf32>
    %44 = arith.addf %33, %43 : vector<8x128xf32>
    %c0_18 = arith.constant 0 : index
    %c0_19 = arith.constant 0 : index
    %45 = vector.load %arg3[%c0_18, %c0_19] : memref<8x1xf32, #tpu.memory_space<vmem>>, vector<8x1xf32>
    %46 = vector.broadcast %45 : vector<8x1xf32> to vector<8x128xf32>
    %47 = arith.addf %44, %46 : vector<8x128xf32>
    %cst_20 = arith.constant 0.000000e+00 : f32
    %48 = vector.broadcast %cst_20 : f32 to vector<8x128xf32>
    %49 = arith.maximumf %47, %48 : vector<8x128xf32>
    %cst_21 = arith.constant 0.000000e+00 : f32
    %50 = vector.broadcast %cst_21 : f32 to vector<8x128xf32>
    %c1_i32_22 = arith.constant 1 : i32
    %51 = tpu.dynamic_rotate %49 by %c1_i32_22 dim 1 : vector<8x128xf32>, i32 -> vector<8x128xf32>
    %c127_i32_23 = arith.constant 127 : i32
    %52 = tpu.dynamic_rotate %49 by %c127_i32_23 dim 1 : vector<8x128xf32>, i32 -> vector<8x128xf32>
    %c0_i32_24 = arith.constant 0 : i32
    %53 = vector.broadcast %c0_i32_24 : i32 to vector<1x128xi32>
    %54 = arith.cmpi eq, %17, %53 : vector<1x128xi32>
    %55 = vector.shape_cast %54 : vector<1x128xi1> to vector<1x128xi1>
    %56 = vector.broadcast %55 : vector<1x128xi1> to vector<8x128xi1>
    %57 = arith.select %56, %52, %51 : vector<8x128xi1>, vector<8x128xf32>
    %c0_25 = arith.constant 0 : index
    %c0_26 = arith.constant 0 : index
    %c0_27 = arith.constant 0 : index
    %58 = vector.load %arg4[%c0_25, %c0_26, %c0_27] : memref<3x8x8xf32, #tpu.memory_space<vmem>>, vector<1x8x8xf32>
    %59 = vector.shape_cast %58 : vector<1x8x8xf32> to vector<8x8xf32>
    %cst_28 = arith.constant dense<0.000000e+00> : vector<8x128xf32>
    %60 = tpu.matmul %59, %57, %cst_28 {dimension_numbers = #tpu.dot_dimension_numbers<[1], [0], [0], [1], [0, 0, 1, 1], [], []>} : vector<8x8xf32>, vector<8x128xf32>, vector<8x128xf32> -> vector<8x128xf32>
    %61 = arith.addf %50, %60 : vector<8x128xf32>
    %c1_29 = arith.constant 1 : index
    %c0_30 = arith.constant 0 : index
    %c0_31 = arith.constant 0 : index
    %62 = vector.load %arg4[%c1_29, %c0_30, %c0_31] : memref<3x8x8xf32, #tpu.memory_space<vmem>>, vector<1x8x8xf32>
    %63 = vector.shape_cast %62 : vector<1x8x8xf32> to vector<8x8xf32>
    %cst_32 = arith.constant dense<0.000000e+00> : vector<8x128xf32>
    %64 = tpu.matmul %63, %49, %cst_32 {dimension_numbers = #tpu.dot_dimension_numbers<[1], [0], [0], [1], [0, 0, 1, 1], [], []>} : vector<8x8xf32>, vector<8x128xf32>, vector<8x128xf32> -> vector<8x128xf32>
    %65 = arith.addf %61, %64 : vector<8x128xf32>
    %c127_i32_33 = arith.constant 127 : i32
    %66 = tpu.dynamic_rotate %49 by %c127_i32_33 dim 1 : vector<8x128xf32>, i32 -> vector<8x128xf32>
    %c1_i32_34 = arith.constant 1 : i32
    %67 = tpu.dynamic_rotate %49 by %c1_i32_34 dim 1 : vector<8x128xf32>, i32 -> vector<8x128xf32>
    %c15_i32_35 = arith.constant 15 : i32
    %68 = vector.broadcast %c15_i32_35 : i32 to vector<1x128xi32>
    %69 = arith.cmpi eq, %17, %68 : vector<1x128xi32>
    %70 = vector.shape_cast %69 : vector<1x128xi1> to vector<1x128xi1>
    %71 = vector.broadcast %70 : vector<1x128xi1> to vector<8x128xi1>
    %72 = arith.select %71, %67, %66 : vector<8x128xi1>, vector<8x128xf32>
    %c2_36 = arith.constant 2 : index
    %c0_37 = arith.constant 0 : index
    %c0_38 = arith.constant 0 : index
    %73 = vector.load %arg4[%c2_36, %c0_37, %c0_38] : memref<3x8x8xf32, #tpu.memory_space<vmem>>, vector<1x8x8xf32>
    %74 = vector.shape_cast %73 : vector<1x8x8xf32> to vector<8x8xf32>
    %cst_39 = arith.constant dense<0.000000e+00> : vector<8x128xf32>
    %75 = tpu.matmul %74, %72, %cst_39 {dimension_numbers = #tpu.dot_dimension_numbers<[1], [0], [0], [1], [0, 0, 1, 1], [], []>} : vector<8x8xf32>, vector<8x128xf32>, vector<8x128xf32> -> vector<8x128xf32>
    %76 = arith.addf %65, %75 : vector<8x128xf32>
    %c0_40 = arith.constant 0 : index
    %c0_41 = arith.constant 0 : index
    %77 = vector.load %arg5[%c0_40, %c0_41] : memref<8x1xf32, #tpu.memory_space<vmem>>, vector<8x1xf32>
    %78 = vector.broadcast %77 : vector<8x1xf32> to vector<8x128xf32>
    %79 = arith.addf %76, %78 : vector<8x128xf32>
    %cst_42 = arith.constant 0.000000e+00 : f32
    %80 = vector.broadcast %cst_42 : f32 to vector<8x128xf32>
    %81 = arith.maximumf %79, %80 : vector<8x128xf32>
    %cst_43 = arith.constant 0.000000e+00 : f32
    %82 = vector.broadcast %cst_43 : f32 to vector<8x128xf32>
    %c0_44 = arith.constant 0 : index
    %c0_45 = arith.constant 0 : index
    %c0_46 = arith.constant 0 : index
    %83 = vector.load %arg6[%c0_44, %c0_45, %c0_46] : memref<3x8x1xf32, #tpu.memory_space<vmem>>, vector<1x8x1xf32>
    %84 = vector.shape_cast %83 : vector<1x8x1xf32> to vector<8x1xf32>
    %c1_i32_47 = arith.constant 1 : i32
    %85 = tpu.dynamic_rotate %81 by %c1_i32_47 dim 1 : vector<8x128xf32>, i32 -> vector<8x128xf32>
    %c127_i32_48 = arith.constant 127 : i32
    %86 = tpu.dynamic_rotate %81 by %c127_i32_48 dim 1 : vector<8x128xf32>, i32 -> vector<8x128xf32>
    %c0_i32_49 = arith.constant 0 : i32
    %87 = vector.broadcast %c0_i32_49 : i32 to vector<1x128xi32>
    %88 = arith.cmpi eq, %17, %87 : vector<1x128xi32>
    %89 = vector.shape_cast %88 : vector<1x128xi1> to vector<1x128xi1>
    %90 = vector.broadcast %89 : vector<1x128xi1> to vector<8x128xi1>
    %91 = arith.select %90, %86, %85 : vector<8x128xi1>, vector<8x128xf32>
    %92 = vector.broadcast %84 : vector<8x1xf32> to vector<8x128xf32>
    %93 = arith.mulf %92, %91 : vector<8x128xf32>
    %94 = arith.addf %82, %93 : vector<8x128xf32>
    %c1_50 = arith.constant 1 : index
    %c0_51 = arith.constant 0 : index
    %c0_52 = arith.constant 0 : index
    %95 = vector.load %arg6[%c1_50, %c0_51, %c0_52] : memref<3x8x1xf32, #tpu.memory_space<vmem>>, vector<1x8x1xf32>
    %96 = vector.shape_cast %95 : vector<1x8x1xf32> to vector<8x1xf32>
    %97 = vector.broadcast %96 : vector<8x1xf32> to vector<8x128xf32>
    %98 = arith.mulf %97, %81 : vector<8x128xf32>
    %99 = arith.addf %94, %98 : vector<8x128xf32>
    %c2_53 = arith.constant 2 : index
    %c0_54 = arith.constant 0 : index
    %c0_55 = arith.constant 0 : index
    %100 = vector.load %arg6[%c2_53, %c0_54, %c0_55] : memref<3x8x1xf32, #tpu.memory_space<vmem>>, vector<1x8x1xf32>
    %101 = vector.shape_cast %100 : vector<1x8x1xf32> to vector<8x1xf32>
    %c127_i32_56 = arith.constant 127 : i32
    %102 = tpu.dynamic_rotate %81 by %c127_i32_56 dim 1 : vector<8x128xf32>, i32 -> vector<8x128xf32>
    %c1_i32_57 = arith.constant 1 : i32
    %103 = tpu.dynamic_rotate %81 by %c1_i32_57 dim 1 : vector<8x128xf32>, i32 -> vector<8x128xf32>
    %c15_i32_58 = arith.constant 15 : i32
    %104 = vector.broadcast %c15_i32_58 : i32 to vector<1x128xi32>
    %105 = arith.cmpi eq, %17, %104 : vector<1x128xi32>
    %106 = vector.shape_cast %105 : vector<1x128xi1> to vector<1x128xi1>
    %107 = vector.broadcast %106 : vector<1x128xi1> to vector<8x128xi1>
    %108 = arith.select %107, %103, %102 : vector<8x128xi1>, vector<8x128xf32>
    %109 = vector.broadcast %101 : vector<8x1xf32> to vector<8x128xf32>
    %110 = arith.mulf %109, %108 : vector<8x128xf32>
    %111 = arith.addf %99, %110 : vector<8x128xf32>
    %cst_59 = arith.constant dense<0.000000e+00> : vector<128xf32>
    %112 = vector.multi_reduction <add>, %111, %cst_59 [0] : vector<8x128xf32> to vector<128xf32>
    %113 = vector.shape_cast %112 : vector<128xf32> to vector<1x128xf32>
    %c0_60 = arith.constant 0 : index
    %c0_61 = arith.constant 0 : index
    %114 = vector.load %arg7[%c0_60, %c0_61] : memref<1x1xf32, #tpu.memory_space<vmem>>, vector<1x1xf32>
    %115 = vector.broadcast %114 : vector<1x1xf32> to vector<1x128xf32>
    %116 = arith.addf %113, %115 : vector<1x128xf32>
    %c0_62 = arith.constant 0 : index
    %c0_63 = arith.constant 0 : index
    %117 = vector.load %arg8[%c0_62, %c0_63] : memref<1x128xf32, #tpu.memory_space<vmem>>, vector<1x128xf32>
    tpu.vector_store %arg8[%c0_62, %c0_63], %116 {strides = array<i32>} : memref<1x128xf32, #tpu.memory_space<vmem>>, vector<1x128xf32>,
    return
  }
  func.func @transform_0(%arg0: i32) -> (i32, i32) {
    %c0_i32 = arith.constant 0 : i32
    %c0_i32_0 = arith.constant 0 : i32
    return %c0_i32, %arg0 : i32, i32
  }
  func.func @transform_1(%arg0: i32) -> (i32, i32, i32) {
    %c0_i32 = arith.constant 0 : i32
    %c0_i32_0 = arith.constant 0 : i32
    %c0_i32_1 = arith.constant 0 : i32
    %c0_i32_2 = arith.constant 0 : i32
    return %c0_i32, %c0_i32_0, %c0_i32_1 : i32, i32, i32
  }
  func.func @transform_2(%arg0: i32) -> (i32, i32) {
    %c0_i32 = arith.constant 0 : i32
    %c0_i32_0 = arith.constant 0 : i32
    %c0_i32_1 = arith.constant 0 : i32
    return %c0_i32, %c0_i32_0 : i32, i32
  }
  func.func @transform_3(%arg0: i32) -> (i32, i32, i32) {
    %c0_i32 = arith.constant 0 : i32
    %c0_i32_0 = arith.constant 0 : i32
    %c0_i32_1 = arith.constant 0 : i32
    %c0_i32_2 = arith.constant 0 : i32
    return %c0_i32, %c0_i32_0, %c0_i32_1 : i32, i32, i32
  }
  func.func @transform_4(%arg0: i32) -> (i32, i32) {
    %c0_i32 = arith.constant 0 : i32
    %c0_i32_0 = arith.constant 0 : i32
    %c0_i32_1 = arith.constant 0 : i32
    return %c0_i32, %c0_i32_0 : i32, i32
  }
  func.func @transform_5(%arg0: i32) -> (i32, i32, i32) {
    %c0_i32 = arith.constant 0 : i32
    %c0_i32_0 = arith.constant 0 : i32
    %c0_i32_1 = arith.constant 0 : i32
    %c0_i32_2 = arith.constant 0 : i32
    return %c0_i32, %c0_i32_0, %c0_i32_1 : i32, i32, i32
  }
  func.func @transform_6(%arg0: i32) -> (i32, i32) {
    %c0_i32 = arith.constant 0 : i32
    %c0_i32_0 = arith.constant 0 : i32
    %c0_i32_1 = arith.constant 0 : i32
    return %c0_i32, %c0_i32_0 : i32, i32
  }
  func.func @transform_7(%arg0: i32) -> (i32, i32) {
    %c0_i32 = arith.constant 0 : i32
    %c0_i32_0 = arith.constant 0 : i32
    return %c0_i32, %arg0 : i32, i32
  }
}

</mosaic_0001>

<bundles_post_ra>
// kernel: tpu_custom_call.1
= control target key start
LH: loop header
LB: loop body
LE: loop exit
PB: predicated region body
PF: predicated region fallthrough
CT: control target
= control target key end

     0   :  { %s822_s0 = inlined_call_operand.vmem [shape: f32[4,128], index: 0, kind: input, shape index: {}]   ;;  %s823_s1 = inlined_call_operand.vmem [shape: f32[3,8,4], index: 1, kind: input, shape index: {}]   ;;  %s824_s2 = inlined_call_operand.vmem [shape: f32[8,1], index: 2, kind: input, shape index: {}]   ;;  %s825_s3 = inlined_call_operand.vmem [shape: f32[3,8,8], index: 3, kind: input, shape index: {}]   ;;  %s826_s4 = inlined_call_operand.vmem [shape: f32[8,1], index: 4, kind: input, shape index: {}]   ;;  %s827_s5 = inlined_call_operand.vmem [shape: f32[3,8,1], index: 5, kind: input, shape index: {}]   ;;  %s828_s6 = inlined_call_operand.<no memory space> [shape: f32[1,1], index: 6, kind: input, shape index: {}]   ;;  %s829_s7 = inlined_call_operand.hbm [shape: f32[1,128], index: 7, kind: output, shape index: {}]  }
   0x1   :  { %v12_v0 = vstv %s828_s6 }
   0x2   :  { %13 = vst [vmem:[#allocation2] sm:$0x1] %v12_v0 }
   0x3   :  { %v29_v1 = vld [vmem:[%s822_s0] sm:$0xf]  ;;  %vm59_vm0 = vcmask 1043456   ;;  %s691_s28 = smov 1   ;;  %v692_v2 = vmov 0.0   ;;  %v604_v3 = vld [vmem:[%s823_s1 + $0x8] sm:$0xff] }
   0x4   :  { %44 = vrot.lane.b32.xlu0 %v29_v1, %s691_s28  ;;  %631 = vmatprep.subr.mxu0 %v692_v2  ;;  %vm55_vm1 = vcmask 31744   ;;  %vm693_vm2 = vmmov 0  }
   0x5   :  { %632 = vmatpush3.msk.msra.mxu0 %vm59_vm0, %v29_v1  ;;  %633 = vmatprep.mubr.msk.f32.mxu0 %vm693_vm2, %v692_v2 }
   0x6   :  { %14 = vsyncpa [#allocation4], 0  ;;  %634 = vmatmul.mubr.msk.f32.vlgmr.msra.gmra.mxu0 %vm55_vm1, %v604_v3  ;;  %636 = vmatprep.subr.mxu1 %v692_v2  ;;  %v292_v4 = vld [vmem:[%s824_s2] sm:$0xff]  ;;  %s694_s8 = smov 127   ;;  %v695_v5 = vmov 0   ;;  %v30_v6 = vlaneseq  ;;  %v609_v14 = vld [vmem:[%s823_s1 + $0x10] sm:$0xff] }
   0x7   :  { %641 = vmatprep.subr.mxu0 %v692_v2  ;;  %638 = vmatprep.mubr.msk.f32.mxu1 %vm693_vm2, %v692_v2  ;;  %v52_v13 = vld [vmem:[%s823_s1] sm:$0xff]  ;;  %v612_v28 = vld [vmem:[%s825_s3 + $0x8] sm:$0xff]  ;;  %vm308_vm5 = vcmask 64512   ;;  %v618_v32 = vld [vmem:[%s827_s5 + $0x10] sm:$0xff] }
   0x8   :  { %46 = vrot.lane.b32.xlu0 %v29_v1, %s694_s8  ;;  %643 = vmatprep.mubr.msk.f32.mxu0 %vm693_vm2, %v692_v2  ;;  %v31_v7 = vand.u32 127, %v30_v6  ;;  %v532_v29 = vld [vmem:[%s826_s4] sm:$0xff]  ;;  %v617_v30 = vld [vmem:[%s827_s5 + $0x8] sm:$0xff]  ;;  %v615_v36 = vld [vmem:[%s825_s3 + $0x10] sm:$0xff]  ;;  %v585_v1 = vshrl.u32 %v30_v6, 7 }
   0x9   :  { %667 = vset.pattern.permute.xlu1 %v695_v5  ;;  %668 = vset.pattern.permute.xlu0 %v695_v5  ;;  %v540_v31 = vld [vmem:[%s827_s5] sm:$0xff] }
   0xa   :  { %295 = vperm.xlu1 %667, %v292_v4   ;;  %v36_v8 = vand.u32 15, %v31_v7  ;;  %v305_v35 = vld [vmem:[%s825_s3] sm:$0xff]  ;;  %v586_v3 = vsub.s32 0, %v585_v1  ;;  %s696_s3 = smov [#allocation3]  }
   0xb   :  { %v578_v50 = vld [vmem:[#allocation2] sm:$0x1]  ;;  %s596_s5 = sshll.u32 %s696_s3, 4  ;;  %s597_s5 = int_to_ptr.vmem [resolvable:$true] %s596_s5 }
   0xc   :  { %vm757_vm3 = vcmp.eq.s32.totalorder %v36_v8, 15  ;;  %vm761_vm4 = vcmp.eq.s32.totalorder %v36_v8, 0  ;;  %s669_s24 = scalar_lea.vmem %s597_s5, 16  ;;  %s673_s25 = scalar_lea.vmem %s597_s5, 32 }
   0xd   :  { %p670_p0 = scmp.ne.s32.totalorder %s597_s5, %s669_s24  ;;  %p674_p1 = scmp.lt.s32.totalorder %s597_s5, %s597_s5 }
   0xe   :  { %p675_p2 = scmp.lt.s32.totalorder %s673_s25, %s669_s24 }
  0x10   :  { %p676_p3 = por %p675_p2, %p674_p1 }
  0x12   :  { %p677_p4 = pnand %p676_p3, %p670_p0 }
  0x76   :  { %v45_v9 = vpop.permute.xlu0 %44 }
  0x7a   :  { %v47_v12 = vpop.permute.xlu0 %46 }
  0x7b   :  { %v212_v15 = vsel %vm757_vm3, %v45_v9, %v47_v12  ;;  %v51_v16 = vsel %vm761_vm4, %v47_v12, %v45_v9 }
  0x7c   :  { %637 = vmatpush3.msk.msra.mxu1 %vm59_vm0, %v51_v16  ;;  %642 = vmatpush3.msk.msra.mxu0 %vm59_vm0, %v212_v15 }
  0x7d   :  { %639 = vmatmul.mubr.msk.f32.vlgmr.msra.gmra.mxu1 %vm55_vm1, %v52_v13  ;;  %644 = vmatmul.mubr.msk.f32.vlgmr.msra.gmra.mxu0 %vm55_vm1, %v609_v14 }
  0x7e   :  { %646 = vmatprep.subr.mxu1 %v692_v2  ;;  %648 = vmatprep.mubr.msk.f32.mxu1 %vm693_vm2, %v692_v2 }
  0x7f   :  { %651 = vmatprep.subr.mxu0 %v692_v2  ;;  %653 = vmatprep.mubr.msk.f32.mxu0 %vm693_vm2, %v692_v2 }
  0x85   :  { %v296_v22 = vpop.permute.xlu1 %295 }
  0xc6   :  { %v129_v17 = vpop.f32.mrf.mxu0 }
  0xc8   :  { %v635_v18 = vpop.f32.mrf.mxu0 }
 0x13d   :  { %v205_v19 = vpop.f32.mrf.mxu1  ;;  %v287_v20 = vpop.f32.mrf.mxu0 }
 0x13e   :  { %v206_v21 = vadd.f32 %v205_v19, %v129_v17 }
 0x13f   :  { %v640_v23 = vpop.f32.mrf.mxu1  ;;  %v645_v24 = vpop.f32.mrf.mxu0 }
 0x140   :  { %v291_v25 = vadd.f32 %v287_v20, %v206_v21 }
 0x142   :  { %v298_v26 = vadd.f32 %v296_v22, %v291_v25 }
 0x144   :  { %v299_v27 = vmax.f32 %v298_v26, 0.0 }
 0x146   :  { %302 = vrot.lane.b32.xlu0 %v299_v27, %s694_s8  ;;  %300 = vrot.lane.b32.xlu1 %v299_v27, %s691_s28 }
 0x147   :  { %647 = vmatpush3.msra.mxu1 %v299_v27 }
 0x148   :  { %649 = vmatmul.mubr.msk.f32.vlgmr.msra.gmra.mxu1 %vm308_vm5, %v612_v28  ;;  %656 = vmatprep.subr.mxu1 %v692_v2 }
 0x149   :  { %658 = vmatprep.mubr.msk.f32.mxu1 %vm693_vm2, %v692_v2 }
 0x14a   :  { %535 = vperm.xlu1 %667, %v532_v29   ;;  %548 = vperm.xlu0 %668, %v540_v31  }
 0x14e   :  { %557 = vperm.xlu1 %667, %v617_v30  }
 0x152   :  { %567 = vperm.xlu1 %667, %v618_v32  }
 0x1b8   :  { %v303_v33 = vpop.permute.xlu0 %302  ;;  %v301_v34 = vpop.permute.xlu1 %300 }
 0x1b9   :  { %v304_v37 = vsel %vm761_vm4, %v303_v33, %v301_v34  ;;  %v455_v38 = vsel %vm757_vm3, %v301_v34, %v303_v33 }
 0x1ba   :  { %652 = vmatpush3.msra.mxu0 %v304_v37  ;;  %657 = vmatpush3.msra.mxu1 %v455_v38 }
 0x1bb   :  { %654 = vmatmul.mubr.msk.f32.vlgmr.msra.gmra.mxu0 %vm308_vm5, %v305_v35  ;;  %659 = vmatmul.mubr.msk.f32.vlgmr.msra.gmra.mxu1 %vm308_vm5, %v615_v36 }
 0x1c5   :  { %v536_v47 = vpop.permute.xlu1 %535  ;;  %v549_v52 = vpop.permute.xlu0 %548 }
 0x1c9   :  { %v558_v51 = vpop.permute.xlu1 %557 }
 0x1cd   :  { %v568_v53 = vpop.permute.xlu1 %567 }
 0x208   :  { %v378_v39 = vpop.f32.mrf.mxu1 }
 0x20a   :  { %v650_v40 = vpop.f32.mrf.mxu1 }
 0x27b   :  { %v451_v41 = vpop.f32.mrf.mxu0  ;;  %v527_v42 = vpop.f32.mrf.mxu1 }
 0x27c   :  { %v452_v43 = vadd.f32 %v451_v41, %v378_v39 }
 0x27d   :  { %v655_v44 = vpop.f32.mrf.mxu0  ;;  %v660_v45 = vpop.f32.mrf.mxu1 }
 0x27e   :  { %v531_v46 = vadd.f32 %v527_v42, %v452_v43 }
 0x280   :  { %v538_v48 = vadd.f32 %v536_v47, %v531_v46 }
 0x282   :  { %v539_v49 = vmax.f32 %v538_v48, 0.0 }
 0x284   :  { %543 = vrot.lane.b32.xlu1 %v539_v49, %s694_s8  ;;  %541 = vrot.lane.b32.xlu0 %v539_v49, %s691_s28  ;;  %v560_v59 = vmul.f32 %v558_v51, %v539_v49 }
 0x288   :  { %581 = vperm.xlu0 %668, %v578_v50  }
 0x2f6   :  { %v544_v54 = vpop.permute.xlu1 %543  ;;  %v542_v55 = vpop.permute.xlu0 %541 }
 0x2f7   :  { %v545_v56 = vsel %vm761_vm4, %v544_v54, %v542_v55  ;;  %v564_v57 = vsel %vm757_vm3, %v542_v55, %v544_v54 }
 0x2f8   :  { %v551_v58 = vmul.f32 %v549_v52, %v545_v56  ;;  %v570_v61 = vmul.f32 %v568_v53, %v564_v57 }
 0x2fa   :  { %v561_v60 = vadd.f32 %v560_v59, %v551_v58 }
 0x2fc   :  { %v571_v62 = vadd.f32 %v570_v61, %v561_v60 }
 0x2fe   :  { %v572_v63 = vrot.slane %v571_v62, 4 }
 0x300   :  { %v573_v0 = vadd.f32 %v572_v63, %v571_v62 }
 0x302   :  { %v574_v2 = vrot.slane %v573_v0, 2 }
 0x303   :  { %v582_v5 = vpop.permute.xlu0 %581 }
 0x304   :  { %v575_v4 = vadd.f32 %v574_v2, %v573_v0  ;;  %v587_v8 = vrot.slane %v582_v5, %v586_v3 }
 0x306   :  { %v576_v7 = vrot.slane %v575_v4, 1 }
 0x308   :  { %v577_v9 = vadd.f32 %v576_v7, %v575_v4 }
 0x30a   :  { %v588_v10 = vadd.f32 %v587_v8, %v577_v9 }
 0x30c   :  { %589 = vst [vmem:[#allocation3] sm:$0x1] %v588_v10 }
 0x30d   :  { %680 = shalt.err (!%p677_p4)
}
 0x30e   :  { %599 = dma.vmem_to_hbm [thread:$0]  %s597_s5, 16, %s829_s7, [#allocation4]  }
 0x30f   :  { %689 = dma.done.wait [#allocation4], 16  }
 0x310   :  { %690 = vsyncadd [#allocation4], 4294967280 }
 0x311   :  { %603 = vsyncpa [#allocation4], 1 }

</bundles_post_ra>
